<compile_context>
chip_gen: v7x
topology: tpu7x:2x2x1
jax: 0.10.0
libtpu: 0.0.40
codegen_flags: <defaults>
</compile_context>

<pallas_src>
import jax
import jax.numpy as jnp
from jax.experimental import pallas as pl
from jax.experimental.pallas import tpu as pltpu

# ---- module hyperparameters (consistent with the PyTorch __init__) ----
VOCAB = 50        # vocab_size
EMB = 32          # embedding_dim
NFILT = 16        # n_filters
FSIZE = 3         # filter_size
HID = 32          # hidden_dim
OUT = 2           # output_dim
MAXLEN = 16       # max_len
BATCH = 2
CONV_OUT = MAXLEN - FSIZE + 1        # 14 == pool kernel size (global max over time)

KF = FSIZE * NFILT                   # 48 = lanes of the fused embed+conv matmul output
OUT_LANES = 128                      # lane-dense logits slab; wrapper slices [:, :OUT]


def _pad8(x):
    return ((x + 7) // 8) * 8


# ---- packed parameter buffer layout (all row offsets 8-aligned, all sections start at lane 0) ----
OFF_M     = 0                            # rows [  0, 50)  cols [0, 48)  : M = emb @ wconv_k (stacked over k)
OFF_W1    = _pad8(OFF_M + VOCAB)         # 56 : rows [ 56, 72)  cols [0, 32)  : fc1 weight [F, H]
OFF_W2    = _pad8(OFF_W1 + NFILT)        # 72 : rows [ 72,104)  cols [0,128)  : fc2 weight [H, 128] (zero-padded)
OFF_BCONV = _pad8(OFF_W2 + HID)          # 104: row  104        cols [0, 16)  : conv bias
OFF_B1    = OFF_BCONV + 8                # 112: row  112        cols [0, 32)  : fc1 bias
OFF_B2    = OFF_B1 + 8                   # 120: row  120        cols [0,128)  : fc2 bias (zero-padded)
P_ROWS    = OFF_B2 + 8                   # 128
P_COLS    = OUT_LANES                    # 128


def cnn_text_kernel(idx_ref, p_ref, out_ref):
    """Fused embedding-gather+conv1d (one matmul) + relu + global max-pool + fc1 + relu + fc2.

    idx_ref : [B*L, 1]         int32  token ids
    p_ref   : [P_ROWS, P_COLS] f32    packed fused weights/biases (layout above)
    out_ref : [B, 128]         f32    lane-dense logits slab (cols >= OUT are zero)
    """
    BL = idx_ref.shape[0]
    L = MAXLEN
    B = BL // L
    K, F, T = FSIZE, NFILT, CONV_OUT

    # -- unpack parameters straight off the ref (8-aligned row offsets, lane 0 starts) --
    m     = p_ref[OFF_M:OFF_M + VOCAB, 0:KF]          # [V, K*F]  fused emb@conv weight
    w1    = p_ref[OFF_W1:OFF_W1 + F, 0:HID]           # [F, H]
    w2    = p_ref[OFF_W2:OFF_W2 + HID, :]             # [H, 128]  (zero-padded past OUT)
    bconv = p_ref[OFF_BCONV:OFF_BCONV + 1, 0:F]       # [1, F]
    b1    = p_ref[OFF_B1:OFF_B1 + 1, 0:HID]           # [1, H]
    b2    = p_ref[OFF_B2:OFF_B2 + 1, :]               # [1, 128]  (zero-padded past OUT)

    # -- 1) embedding gather + conv contraction fused into ONE exact one-hot MXU matmul --
    idx = idx_ref[...]                                            # [BL, 1] int32
    iota_v = jax.lax.broadcasted_iota(jnp.int32, (BL, VOCAB), 1)
    one_hot = (iota_v == idx).astype(jnp.float32)                 # [BL, V] exact selector
    c = jnp.dot(one_hot, m, preferred_element_type=jnp.float32)   # [BL, K*F]

    # -- 2) conv[r, f] = bconv[f] + sum_k c[(r+k) mod BL, k*F:(k+1)*F]
    # XLU roll by BL-k == roll by -k along rows; wrap only contaminates rows with t >= T,
    # which are masked out before the pool.
    conv = c[:, 0:F]
    for k in range(1, K):
        conv = conv + pltpu.roll(c[:, k * F:(k + 1) * F], BL - k, axis=0)
    conv = conv + bconv                                           # [BL, F]

    # -- 3) ReLU, mask the K-1 wrapped tail time positions, global max-pool over time --
    act = jnp.maximum(conv, 0.0).reshape(B, L, F)                 # leading-dim split (no relayout)
    t_iota = jax.lax.broadcasted_iota(jnp.int32, (B, L, F), 1)
    act = jnp.where(t_iota < T, act, 0.0)                         # 0-mask safe post-ReLU (>= 0)
    pooled = jnp.max(act, axis=1)                                 # [B, F] single sublane reduce

    # -- 4) fc1 + ReLU (+ dropout == identity in eval) + fc2 (lane-dense, cols >= OUT are 0) --
    h = jnp.maximum(jnp.dot(pooled, w1, preferred_element_type=jnp.float32) + b1, 0.0)
    out = jnp.dot(h, w2, preferred_element_type=jnp.float32) + b2  # [B, 128]
    out_ref[...] = out.astype(out_ref.dtype)


def pack_params(emb_table, wconv_pt, bconv, w1_pt, b1, w2_pt, b2):
    """Fuse emb table with conv weights and pack all params into one f32 buffer (one DMA).

    emb_table: [V, E], wconv_pt: [F, E, K] (PyTorch Conv1d layout), bconv: [1, F],
    w1_pt: [H, F], b1: [1, H], w2_pt: [O, H], b2: [1, O].
    """
    hi = jax.lax.Precision.HIGHEST
    # M[:, k*F:(k+1)*F] = emb_table @ wconv[:, :, k].T  -> [V, K*F]
    m = jnp.concatenate(
        [jnp.dot(emb_table, wconv_pt[:, :, k].T, precision=hi) for k in range(FSIZE)],
        axis=1)
    p = jnp.zeros((P_ROWS, P_COLS), jnp.float32)
    p = p.at[OFF_M:OFF_M + VOCAB, 0:KF].set(m)
    p = p.at[OFF_W1:OFF_W1 + NFILT, 0:HID].set(w1_pt.T)       # [H,F] -> [F,H]
    p = p.at[OFF_W2:OFF_W2 + HID, 0:OUT].set(w2_pt.T)         # [O,H] -> [H,O] (rest stays 0)
    p = p.at[OFF_BCONV, 0:NFILT].set(bconv.reshape(NFILT))
    p = p.at[OFF_B1, 0:HID].set(b1.reshape(HID))
    p = p.at[OFF_B2, 0:OUT].set(b2.reshape(OUT))              # rest stays 0
    return p


@jax.jit
def cnn_text_forward(text_indices, packed_params):
    """text_indices: [B, L] int32 -> logits [B, OUT] f32 (single fused 2-input pallas_call)."""
    B, L = text_indices.shape
    idx2d = text_indices.reshape(B * L, 1).astype(jnp.int32)
    vmem = pl.BlockSpec(memory_space=pltpu.MemorySpace.VMEM)
    padded = pl.pallas_call(
        cnn_text_kernel,
        out_shape=jax.ShapeDtypeStruct((B, OUT_LANES), jnp.float32),
        in_specs=[vmem, vmem],
        out_specs=vmem,
    )(idx2d, packed_params)
    return padded[:, :OUT]


def reference_forward(text_indices, emb_table, wconv_pt, bconv, w1_pt, b1, w2_pt, b2):
    """Pure-JAX reference mirroring the PyTorch forward (for correctness checking)."""
    hi = jax.lax.Precision.HIGHEST
    embedded = emb_table[text_indices]                        # [B, L, E]
    K = wconv_pt.shape[2]
    T = embedded.shape[1] - K + 1
    wconv = jnp.transpose(wconv_pt, (2, 1, 0))                # [K, E, F]
    conv = bconv.reshape(1, 1, -1)
    for k in range(K):
        conv = conv + jnp.einsum('ble,ef->blf', embedded[:, k:k + T, :], wconv[k],
                                 precision=hi)
    act = jnp.maximum(conv, 0.0)
    pooled = jnp.max(act, axis=1)                             # [B, F] (== flatten of [B, F, 1])
    h = jnp.maximum(pooled @ w1_pt.T + b1, 0.0)               # dropout == identity in eval
    return h @ w2_pt.T + b2


if __name__ == "__main__":
    key = jax.random.PRNGKey(0)
    k_tok, k_emb, k_wc, k_bc, k_w1, k_b1, k_w2, k_b2 = jax.random.split(key, 8)

    # Deterministic synthetic token ids; index 0 is the padding index.
    text_indices = jax.random.randint(k_tok, (BATCH, MAXLEN), 0, VOCAB, dtype=jnp.int32)

    # Parameters (deterministic init). Embedding row 0 zeroed (padding_idx=0).
    emb_table = 0.1 * jax.random.normal(k_emb, (VOCAB, EMB), jnp.float32)
    emb_table = emb_table.at[0].set(0.0)

    wconv_pt = 0.1 * jax.random.normal(k_wc, (NFILT, EMB, FSIZE), jnp.float32)  # [F, E, K]
    bconv    = 0.1 * jax.random.normal(k_bc, (1, NFILT), jnp.float32)
    w1_pt    = 0.1 * jax.random.normal(k_w1, (HID, NFILT), jnp.float32)         # [H, F]
    b1       = 0.1 * jax.random.normal(k_b1, (1, HID), jnp.float32)
    w2_pt    = 0.1 * jax.random.normal(k_w2, (OUT, HID), jnp.float32)           # [O, H]
    b2       = 0.1 * jax.random.normal(k_b2, (1, OUT), jnp.float32)

    packed = pack_params(emb_table, wconv_pt, bconv, w1_pt, b1, w2_pt, b2)

    logits = cnn_text_forward(text_indices, packed)
    logits = jax.block_until_ready(logits)

    ref = reference_forward(text_indices, emb_table, wconv_pt, bconv, w1_pt, b1, w2_pt, b2)
    assert logits.shape == (BATCH, OUT)
    assert jnp.allclose(logits, ref, atol=1e-4, rtol=1e-4), (logits, ref)

    print("KERNEL_OK")
</pallas_src>

<mosaic_0001>
module attributes {stable_mosaic.version = 11 : i64} {
  func.func @cnn_text_kernel(%arg0: memref<32x1xi32, #tpu.memory_space<vmem>>, %arg1: memref<128x128xf32, #tpu.memory_space<vmem>>, %arg2: memref<2x128xf32, #tpu.memory_space<vmem>>) attributes {dimension_semantics = [], scalar_prefetch = 0 : i64, scratch_operands = 0 : i64, tpu.core_type = #tpu.core_type<tc>} {
    %c0 = arith.constant 0 : index
    %c0_0 = arith.constant 0 : index
    %0 = vector.load %arg1[%c0, %c0_0] : memref<128x128xf32, #tpu.memory_space<vmem>>, vector<50x48xf32>
    %c56 = arith.constant 56 : index
    %c0_1 = arith.constant 0 : index
    %1 = vector.load %arg1[%c56, %c0_1] : memref<128x128xf32, #tpu.memory_space<vmem>>, vector<16x32xf32>
    %c72 = arith.constant 72 : index
    %c0_2 = arith.constant 0 : index
    %2 = vector.load %arg1[%c72, %c0_2] : memref<128x128xf32, #tpu.memory_space<vmem>>, vector<32x128xf32>
    %c104 = arith.constant 104 : index
    %c0_3 = arith.constant 0 : index
    %3 = vector.load %arg1[%c104, %c0_3] : memref<128x128xf32, #tpu.memory_space<vmem>>, vector<1x16xf32>
    %c112 = arith.constant 112 : index
    %c0_4 = arith.constant 0 : index
    %4 = vector.load %arg1[%c112, %c0_4] : memref<128x128xf32, #tpu.memory_space<vmem>>, vector<1x32xf32>
    %c120 = arith.constant 120 : index
    %c0_5 = arith.constant 0 : index
    %5 = vector.load %arg1[%c120, %c0_5] : memref<128x128xf32, #tpu.memory_space<vmem>>, vector<1x128xf32>
    %c0_6 = arith.constant 0 : index
    %c0_7 = arith.constant 0 : index
    %6 = vector.load %arg0[%c0_6, %c0_7] : memref<32x1xi32, #tpu.memory_space<vmem>>, vector<32x1xi32>
    %7 = tpu.iota {dimensions = array<i32: 1>} : vector<32x50xi32>
    %8 = vector.broadcast %6 : vector<32x1xi32> to vector<32x50xi32>
    %9 = arith.cmpi eq, %7, %8 : vector<32x50xi32>
    %10 = arith.extui %9 : vector<32x50xi1> to vector<32x50xi32>
    %11 = arith.sitofp %10 : vector<32x50xi32> to vector<32x50xf32>
    %cst = arith.constant dense<0.000000e+00> : vector<32x48xf32>
    %12 = tpu.matmul %11, %0, %cst {dimension_numbers = #tpu.dot_dimension_numbers<[1], [0], [0], [1], [0, 0, 1, 1], [], []>} : vector<32x50xf32>, vector<50x48xf32>, vector<32x48xf32> -> vector<32x48xf32>
    %13 = vector.extract_strided_slice %12 {offsets = [0, 0], sizes = [32, 16], strides = [1, 1]} : vector<32x48xf32> to vector<32x16xf32>
    %14 = vector.extract_strided_slice %12 {offsets = [0, 16], sizes = [32, 16], strides = [1, 1]} : vector<32x48xf32> to vector<32x16xf32>
    %c31_i32 = arith.constant 31 : i32
    %15 = tpu.dynamic_rotate %14 by %c31_i32 dim 0 : vector<32x16xf32>, i32 -> vector<32x16xf32>
    %16 = arith.addf %13, %15 : vector<32x16xf32>
    %17 = vector.extract_strided_slice %12 {offsets = [0, 32], sizes = [32, 16], strides = [1, 1]} : vector<32x48xf32> to vector<32x16xf32>
    %c30_i32 = arith.constant 30 : i32
    %18 = tpu.dynamic_rotate %17 by %c30_i32 dim 0 : vector<32x16xf32>, i32 -> vector<32x16xf32>
    %19 = arith.addf %16, %18 : vector<32x16xf32>
    %20 = vector.broadcast %3 : vector<1x16xf32> to vector<32x16xf32>
    %21 = arith.addf %19, %20 : vector<32x16xf32>
    %cst_8 = arith.constant 0.000000e+00 : f32
    %22 = vector.broadcast %cst_8 : f32 to vector<32x16xf32>
    %23 = arith.maximumf %21, %22 : vector<32x16xf32>
    %24 = vector.shape_cast %23 : vector<32x16xf32> to vector<2x16x16xf32>
    %25 = tpu.iota {dimensions = array<i32: 1>} : vector<2x16x16xi32>
    %c14_i32 = arith.constant 14 : i32
    %26 = vector.broadcast %c14_i32 : i32 to vector<2x16x16xi32>
    %27 = arith.cmpi slt, %25, %26 : vector<2x16x16xi32>
    %cst_9 = arith.constant 0.000000e+00 : f32
    %28 = vector.broadcast %cst_9 : f32 to vector<2x16x16xf32>
    %29 = arith.select %27, %24, %28 : vector<2x16x16xi1>, vector<2x16x16xf32>
    %cst_10 = arith.constant dense<0xFF800000> : vector<2x16xf32>
    %30 = vector.multi_reduction <maximumf>, %29, %cst_10 [1] : vector<2x16x16xf32> to vector<2x16xf32>
    %cst_11 = arith.constant dense<0.000000e+00> : vector<2x32xf32>
    %31 = tpu.matmul %30, %1, %cst_11 {dimension_numbers = #tpu.dot_dimension_numbers<[1], [0], [0], [1], [0, 0, 1, 1], [], []>} : vector<2x16xf32>, vector<16x32xf32>, vector<2x32xf32> -> vector<2x32xf32>
    %32 = vector.broadcast %4 : vector<1x32xf32> to vector<2x32xf32>
    %33 = arith.addf %31, %32 : vector<2x32xf32>
    %cst_12 = arith.constant 0.000000e+00 : f32
    %34 = vector.broadcast %cst_12 : f32 to vector<2x32xf32>
    %35 = arith.maximumf %33, %34 : vector<2x32xf32>
    %cst_13 = arith.constant dense<0.000000e+00> : vector<2x128xf32>
    %36 = tpu.matmul %35, %2, %cst_13 {dimension_numbers = #tpu.dot_dimension_numbers<[1], [0], [0], [1], [0, 0, 1, 1], [], []>} : vector<2x32xf32>, vector<32x128xf32>, vector<2x128xf32> -> vector<2x128xf32>
    %37 = vector.broadcast %5 : vector<1x128xf32> to vector<2x128xf32>
    %38 = arith.addf %36, %37 : vector<2x128xf32>
    %c0_14 = arith.constant 0 : index
    %c0_15 = arith.constant 0 : index
    %39 = vector.load %arg2[%c0_14, %c0_15] : memref<2x128xf32, #tpu.memory_space<vmem>>, vector<2x128xf32>
    tpu.vector_store %arg2[%c0_14, %c0_15], %38 {strides = array<i32>} : memref<2x128xf32, #tpu.memory_space<vmem>>, vector<2x128xf32>,
    return
  }
}

</mosaic_0001>

<bundles_post_ra>
// kernel: cnn_text_forward.1
= control target key start
LH: loop header
LB: loop body
LE: loop exit
PB: predicated region body
PF: predicated region fallthrough
CT: control target
= control target key end

     0   :  { %7 = vsyncpa [#allocation3], 0  ;;  %s684_s0 = inlined_call_operand.vmem [shape: s32[32,1], index: 0, kind: input, shape index: {}]   ;;  %s685_s1 = inlined_call_operand.hbm [shape: f32[128,128], index: 1, kind: input, shape index: {}]   ;;  %s686_s2 = inlined_call_operand.hbm [shape: f32[2,128], index: 2, kind: output, shape index: {}]  }
   0x1   :  { %8 = vsyncpa [#allocation4], 0  ;;  %s595_s9 = smov [#allocation2]   ;;  %s547_s13 = scalar_lea.hbm %s685_s1, 2048 }
   0x2   :  { %s16_s10 = sshll.u32 %s595_s9, 4  ;;  %p548_p0 = scmp.ne.s32.totalorder %s685_s1, %s547_s13  ;;  %s17_s10 = int_to_ptr.vmem [resolvable:$true] %s16_s10 }
   0x3   :  { %p551_p1 = scmp.lt.u32.totalorder %s547_s13, %s685_s1 }
   0x5   :  { %p553_p2 = pnand %p551_p1, %p548_p0 }
   0x7   :  { %556 = shalt.err (!%p553_p2)
}
   0x8   :  { %s557_s18 = scalar_lea.vmem %s17_s10, 2048  ;;  %p562_p4 = scmp.lt.s32.totalorder %s17_s10, %s17_s10 }
   0x9   :  { %p558_p3 = scmp.ne.s32.totalorder %s17_s10, %s557_s18  ;;  %p563_p5 = scmp.lt.s32.totalorder %s557_s18, %s557_s18 }
   0xb   :  { %p564_p6 = por %p563_p5, %p562_p4 }
   0xd   :  { %p565_p7 = pnand %p564_p6, %p558_p3 }
   0xf   :  { %568 = shalt.err (!%p565_p7)
}
  0x10   :  { %s596_s19 = smov 128   ;;  %s597_s20 = smov 8  }
  0x11   :  { %22 = dma.hbm_to_vmem [thread:$0]  %s685_s1, 2048, %s17_s10, [#allocation3], %s596_s19, %s596_s19, %s597_s20  }
  0x12   :  { %591 = dma.done.wait [#allocation3], 2048  }
  0x13   :  { %592 = vsyncadd [#allocation3], 4294965248  ;;  %v598_v0 = vmov 0   ;;  %v42_v1 = vld [vmem:[%s684_s0] sm:$0xff]  ;;  %v44_v2 = vld [vmem:[%s684_s0 + $0x10] sm:$0xff]  ;;  %vm85_vm0 = vcmask 1041408   ;;  %v46_v15 = vlaneseq }
  0x14   :  { %545 = vset.pattern.permute.xlu0 %v598_v0  ;;  %546 = vset.pattern.permute.xlu1 %v598_v0  ;;  %v43_v3 = vld [vmem:[%s684_s0 + $0x8] sm:$0xff]  ;;  %v26_v4 = vld [vmem:[#allocation2] sm:$0xff]  ;;  %v45_v6 = vld [vmem:[%s684_s0 + $0x18] sm:$0xff]  ;;  %vm72_vm1 = vcmask 408576   ;;  %v599_v19 = vmov 0.0   ;;  %s600_s0 = smov 112  }
  0x15   :  { %49 = vperm.xlu0 %545, %v42_v1   ;;  %55 = vperm.xlu1 %546, %v44_v2   ;;  %v27_v5 = vld [vmem:[#allocation2 + $0x8] sm:$0xff]  ;;  %v28_v8 = vld [vmem:[#allocation2 + $0x10] sm:$0xff]  ;;  %v29_v9 = vld [vmem:[#allocation2 + $0x18] sm:$0xff]  ;;  %v47_v16 = vand.u32 127, %v46_v15  ;;  %s601_s30 = smov 96   ;;  %v602_v32 = vmov 0.0|0.0  }
  0x16   :  { %v514_v7 = vpack.c.bf16 %v27_v5, %v26_v4  ;;  %v518_v10 = vpack.c.bf16 %v29_v9, %v28_v8  ;;  %v30_v11 = vld [vmem:[#allocation2 + $0x20] sm:$0xff]  ;;  %v31_v12 = vld [vmem:[#allocation2 + $0x28] sm:$0xff]  ;;  %v32_v14 = vld [vmem:[#allocation2 + $0x30] sm:$0x3]  ;;  %526 = vmatprep.subr.bf16.mxu1 %v602_v32  ;;  %vm603_vm6 = vmmov 0   ;;  %v195_v34 = vshrl.u32 %v46_v15, 7 }
  0x17   :  { %v522_v13 = vpack.c.bf16 %v31_v12, %v30_v11  ;;  %v33_v30 = vld [vmem:[#allocation2 + $0x38] sm:$0xff]  ;;  %v34_v31 = vld [vmem:[#allocation2 + $0x40] sm:$0xff]  ;;  %500 = vmatprep.mubr.msk.f32.mxu1 %vm603_vm6, %v599_v19  ;;  %v452_v56 = vld [vmem:[#allocation2 + $0x68] ss:$0 sm:$0xff]  ;;  %vm249_vm10 = vcmask 130048   ;;  %vm274_vm11 = vcmask 1041409  }
  0x18   :  { %515 = vmatprep.subr.bf16.mxu0 %v514_v7  ;;  %v527_v33 = vpack.c.bf16 %v34_v31, %v33_v30  ;;  %vm196_vm7 = vcmp.lt.s32.totalorder %v195_v34, 7  ;;  %vm221_vm8 = vcmp.lt.s32.totalorder %v195_v34, 6  ;;  %v242_v62 = vadd.s32 8, %v195_v34  ;;  %v35_v31 = vld [vmem:[#allocation2 + $0x48] sm:$0xff]  ;;  %s604_s3 = smov [#allocation5]  }
  0x19   :  { %52 = vperm.xlu0 %545, %v43_v3   ;;  %58 = vperm.xlu1 %546, %v45_v6   ;;  %vm353_vm12 = vcmask 261120   ;;  %s434_s4 = sshll.u32 %s604_s3, 4  ;;  %s435_s4 = int_to_ptr.vmem [resolvable:$true] %s434_s4 }
  0x1a   :  { %517 = vmatpush3.bf16.msra.mxu0 %v514_v7  ;;  %528 = vmatpush3.bf16.msra.mxu1 %v527_v33  ;;  %vm244_vm9 = vcmp.lt.s32.totalorder %v242_v62, 14  ;;  %v36_v33 = vld [vmem:[#allocation2 + $0x50] sm:$0xff]  ;;  %s569_s5 = scalar_lea.vmem %s435_s4, 32  ;;  %p574_p9 = scmp.lt.s32.totalorder %s435_s4, %s435_s4 }
  0x1b   :  { %519 = vmatprep.subr.bf16.mxu0 %v518_v10  ;;  %529 = vmatprep.subr.bf16.mxu1 %v602_v32  ;;  %p570_p8 = scmp.ne.s32.totalorder %s435_s4, %s569_s5  ;;  %p575_p10 = scmp.lt.s32.totalorder %s569_s5, %s569_s5 }
  0x1d   :  { %p576_p11 = por %p575_p10, %p574_p9 }
  0x1e   :  { %521 = vmatpush3.bf16.msra.mxu0 %v518_v10 }
  0x1f   :  { %523 = vmatprep.subr.bf16.mxu0 %v522_v13  ;;  %p577_p12 = pnand %p576_p11, %p570_p8 }
  0x22   :  { %525 = vmatpush3.bf16.msra.mxu0 %v522_v13 }
  0x23   :  { %488 = vmatprep.subr.msk.mxu0 %vm85_vm0, %v32_v14 }
  0x26   :  { %489 = vmatpush3.msk.msra.mxu0 %vm85_vm0, %v32_v14 }
  0x94   :  { %v50_v17 = vpop.permute.xlu0 %49  ;;  %v56_v18 = vpop.permute.xlu1 %55 }
  0x95   :  { %vm60_vm2 = vcmp.eq.s32.totalorder %v47_v16, %v50_v17  ;;  %vm62_vm3 = vcmp.eq.s32.totalorder %v47_v16, %v56_v18 }
  0x96   :  { %v443_v20 = vsel %vm60_vm2, 1.0, %v599_v19  ;;  %v445_v23 = vsel %vm62_vm3, 1.0, %v599_v19 }
  0x97   :  { %490 = vmatprep.mubr.msk.f32.mxu0 %vm72_vm1, %v443_v20 }
  0x98   :  { %v53_v21 = vpop.permute.xlu0 %52  ;;  %v59_v22 = vpop.permute.xlu1 %58 }
  0x99   :  { %vm61_vm4 = vcmp.eq.s32.totalorder %v47_v16, %v53_v21  ;;  %vm63_vm5 = vcmp.eq.s32.totalorder %v47_v16, %v59_v22 }
  0x9a   :  { %v444_v24 = vsel %vm61_vm4, 1.0, %v599_v19  ;;  %v446_v25 = vsel %vm63_vm5, 1.0, %v599_v19 }
  0x9b   :  { %491 = vmatmul.mubr.msk.f32.vlgmr.msra.gmra.mrb[0].mxu0 %vm72_vm1, %v444_v24 }
  0x9c   :  { %493 = vmatprep.mubr.msk.f32.mxu0 %vm72_vm1, %v445_v23 }
  0x9f   :  { %494 = vmatmul.mubr.msk.f32.gmra.mrb[2].mxu0 %vm72_vm1, %v446_v25 }
 0x16e   :  { %v492_v26 = vpop.f32.mrb[0].mxu0 }
 0x16f   :  { %180 = vrot.lane.b32.xlu1 %v492_v26, %s600_s0  ;;  %v155_v27 = vpop.f32.mrb[1].mxu0 }
 0x170   :  { %178 = vrot.lane.b32.xlu0 %v155_v27, %s600_s0 }
 0x172   :  { %v495_v28 = vpop.f32.mrb[2].mxu0 }
 0x173   :  { %207 = vrot.lane.b32.xlu1 %v492_v26, %s601_s30  ;;  %v165_v29 = vpop.f32.mrb[3].mxu0 }
 0x174   :  { %205 = vrot.lane.b32.xlu0 %v155_v27, %s601_s30 }
 0x177   :  { %184 = vrot.lane.b32.xlu1 %v495_v28, %s600_s0 }
 0x178   :  { %182 = vrot.lane.b32.xlu0 %v165_v29, %s600_s0 }
 0x17b   :  { %211 = vrot.lane.b32.xlu1 %v495_v28, %s601_s30 }
 0x17c   :  { %209 = vrot.lane.b32.xlu0 %v165_v29, %s601_s30 }
 0x1e1   :  { %v181_v35 = vpop.permute.xlu1 %180 }
 0x1e2   :  { %v191_v36 = vrot.slane %v181_v35, 1  ;;  %v179_v37 = vpop.permute.xlu0 %178 }
 0x1e3   :  { %v190_v38 = vrot.slane %v179_v37, 1  ;;  %v530_v37 = vpack.c.bf16 %v36_v33, %v35_v31 }
 0x1e5   :  { %v199_v39 = vsel %vm196_vm7, %v190_v38, %v191_v36  ;;  %v208_v40 = vpop.permute.xlu1 %207 }
 0x1e6   :  { %v201_v41 = vadd.f32 %v199_v39, %v155_v27  ;;  %v218_v42 = vrot.slane %v208_v40, 2  ;;  %v206_v43 = vpop.permute.xlu0 %205  ;;  %v37_v39 = vld [vmem:[#allocation2 + $0x58] sm:$0xff]  ;;  %v38_v40 = vld [vmem:[#allocation2 + $0x60] sm:$0xff] }
 0x1e7   :  { %v217_v44 = vrot.slane %v206_v43, 2 }
 0x1e9   :  { %v224_v45 = vsel %vm221_vm8, %v217_v44, %v218_v42  ;;  %v185_v46 = vpop.permute.xlu1 %184 }
 0x1ea   :  { %v226_v47 = vadd.f32 %v224_v45, %v201_v41  ;;  %v193_v48 = vrot.slane %v185_v46, 1  ;;  %v183_v49 = vpop.permute.xlu0 %182  ;;  %v533_v41 = vpack.c.bf16 %v38_v40, %v37_v39 }
 0x1eb   :  { %v192_v50 = vrot.slane %v183_v49, 1 }
 0x1ec   :  { %v200_v51 = vsel %vm196_vm7, %v193_v48, %v190_v38  ;;  %v234_v0 = vadd.f32 %v452_v56, %v226_v47  ;;  %v455_v47 = vld [vmem:[#allocation2 + $0x78] ss:$0 sm:$0xff] }
 0x1ed   :  { %v204_v52 = vadd.f32 %v495_v28, %v200_v51  ;;  %v197_v53 = vsel %vm196_vm7, %v192_v50, %v193_v48  ;;  %v198_v54 = vsel %vm196_vm7, %v191_v36, %v192_v50  ;;  %v212_v55 = vpop.permute.xlu1 %211 }
 0x1ee   :  { %v202_v57 = vadd.f32 %v492_v26, %v198_v54  ;;  %v203_v58 = vadd.f32 %v197_v53, %v165_v29  ;;  %v220_v59 = vrot.slane %v212_v55, 2  ;;  %v210_v60 = vpop.permute.xlu0 %209  ;;  %v238_v9 = vmax.f32 %v234_v0, 0.0 }
 0x1ef   :  { %v219_v61 = vrot.slane %v210_v60, 2 }
 0x1f0   :  { %v225_v63 = vsel %vm221_vm8, %v220_v59, %v217_v44  ;;  %v250_v17 = vsel %vm249_vm10, %v238_v9, -inf }
 0x1f1   :  { %v229_v1 = vadd.f32 %v225_v63, %v204_v52  ;;  %v222_v2 = vsel %vm221_vm8, %v219_v61, %v220_v59  ;;  %v223_v3 = vsel %vm221_vm8, %v218_v42, %v219_v61  ;;  %v453_v42 = vld [vmem:[#allocation2 + $0x70] ss:$0 sm:$0xff] }
 0x1f2   :  { %v227_v4 = vadd.f32 %v223_v3, %v202_v57  ;;  %v228_v5 = vadd.f32 %v222_v2, %v203_v58 }
 0x1f3   :  { %v237_v6 = vadd.f32 %v452_v56, %v229_v1 }
 0x1f4   :  { %v235_v7 = vadd.f32 %v452_v56, %v227_v4  ;;  %v236_v8 = vadd.f32 %v452_v56, %v228_v5 }
 0x1f5   :  { %v241_v10 = vmax.f32 %v237_v6, 0.0 }
 0x1f6   :  { %v239_v11 = vmax.f32 %v235_v7, 0.0  ;;  %v240_v12 = vmax.f32 %v236_v8, 0.0 }
 0x1f7   :  { %v248_v13 = vsel %vm244_vm9, %v241_v10, 0.0 }
 0x1f8   :  { %v246_v14 = vsel %vm244_vm9, %v239_v11, 0.0  ;;  %v259_v15 = vsel %vm249_vm10, %v240_v12, -inf  ;;  %v260_v16 = vsel %vm249_vm10, %v248_v13, -inf }
 0x1f9   :  { %v251_v18 = vsel %vm249_vm10, %v246_v14, -inf  ;;  %v261_v20 = vmax.f32 %v259_v15, %v260_v16 }
 0x1fa   :  { %v252_v21 = vmax.f32 %v250_v17, %v251_v18 }
 0x1fb   :  { %v262_v22 = vrot.slane %v261_v20, 4 }
 0x1fc   :  { %v253_v23 = vrot.slane %v252_v21, 4 }
 0x1fd   :  { %v263_v24 = vmax.f32 %v261_v20, %v262_v22 }
 0x1fe   :  { %v254_v25 = vmax.f32 %v252_v21, %v253_v23 }
 0x1ff   :  { %v264_v26 = vrot.slane %v263_v24, 2 }
 0x200   :  { %v255_v27 = vrot.slane %v254_v25, 2 }
 0x201   :  { %v265_v28 = vmax.f32 %v263_v24, %v264_v26 }
 0x202   :  { %v256_v29 = vmax.f32 %v254_v25, %v255_v27 }
 0x203   :  { %v266_v30 = vrot.slane %v265_v28, 1 }
 0x204   :  { %v257_v34 = vrot.slane %v256_v29, 1 }
 0x205   :  { %v267_v35 = vmax.f32 %v265_v28, %v266_v30 }
 0x206   :  { %v258_v36 = vmax.f32 %v256_v29, %v257_v34 }
 0x208   :  { %v275_v38 = vsel %vm274_vm11, %v267_v35, %v258_v36 }
 0x209   :  { %501 = vmatmul.mubr.msk.f32.vlgmr.msra.gmra.mrb[0].mxu1 %vm249_vm10, %v275_v38 }
 0x20a   :  { %531 = vmatpush3.bf16.msra.mxu1 %v530_v37  ;;  %511 = vmatprep.mubr.msk.f32.mxu1 %vm603_vm6, %v599_v19 }
 0x20b   :  { %532 = vmatprep.subr.bf16.mxu1 %v602_v32 }
 0x20e   :  { %534 = vmatpush3.bf16.msra.mxu1 %v533_v41 }
 0x2dc   :  { %v344_v43 = vpop.f32.mrb[0].mxu1 }
 0x2dd   :  { %v345_v44 = vadd.f32 %v453_v42, %v344_v43  ;;  %v502_v45 = vpop.f32.mrb[1].mxu1 }
 0x2df   :  { %v348_v46 = vmax.f32 %v345_v44, 0.0 }
 0x2e1   :  { %512 = vmatmul.mubr.msk.f32.vlgmr.msra.gmra.mrb[2].mxu1 %vm353_vm12, %v348_v46 }
 0x3b4   :  { %v423_v48 = vpop.f32.mrb[2].mxu1 }
 0x3b5   :  { %v424_v49 = vadd.f32 %v455_v47, %v423_v48  ;;  %v513_v50 = vpop.f32.mrb[3].mxu1 }
 0x3b7   :  { %427 = vst [vmem:[#allocation5] sm:$0x3] %v424_v49 }
 0x3b8   :  { %580 = shalt.err (!%p577_p12)
}
 0x3b9   :  { %s581_s8 = scalar_lea.hbm %s686_s2, 32 }
 0x3ba   :  { %p582_p13 = scmp.ne.s32.totalorder %s686_s2, %s581_s8  ;;  %p585_p0 = scmp.lt.u32.totalorder %s581_s8, %s686_s2 }
 0x3bc   :  { %p587_p1 = pnand %p585_p0, %p582_p13 }
 0x3be   :  { %590 = shalt.err (!%p587_p1)
}
 0x3bf   :  { %437 = dma.vmem_to_hbm [thread:$0]  %s435_s4, 32, %s686_s2, [#allocation4]  }
 0x3c0   :  { %593 = dma.done.wait [#allocation4], 32  }
 0x3c1   :  { %594 = vsyncadd [#allocation4], 4294967264 }
 0x3c2   :  { %441 = vsyncpa [#allocation3], 1 }
 0x3c3   :  { %442 = vsyncpa [#allocation4], 1 }

</bundles_post_ra>
